<compile_context>
chip_gen: v6e
topology: v6e:2x2x1
jax: 0.10.0
libtpu: 0.0.40
codegen_flags: <defaults>
</compile_context>

<pallas_src>
import jax
import jax.numpy as jnp
from jax import lax
from jax.experimental import pallas as pl
from jax.experimental.pallas import tpu as pltpu


def _fused_mha_kernel(q_ref, k_ref, v_ref, wq_ref, wk_ref, wv_ref, wo_ref,
                      o_ref):
    # Refs (per grid step = one batch element):
    #   q_ref: (H, Lq, D) bf16, k_ref/v_ref: (H, Lk, D) bf16   (heads leading)
    #   wq/wk/wv_ref: (D, D) bf16, (in, out) layout; 1/sqrt(D) folded into wq
    #   wo_ref: (H, D, E) bf16 = per-head row blocks of Wo^T (in, out)
    #   o_ref:  (Lq, E) f32
    H, Lq, _ = q_ref.shape
    E = o_ref.shape[-1]
    bf16 = jnp.bfloat16

    wq = wq_ref[...]
    wk = wk_ref[...]
    wv = wv_ref[...]

    def head_body(h, acc):
        # Per-head Q/K/V projections with the shared (D, D) weights (no
        # block-diagonal expansion); bf16 MXU operands, f32 accumulation.
        qh = jnp.dot(q_ref[h], wq, preferred_element_type=jnp.float32)
        kh = jnp.dot(k_ref[h], wk, preferred_element_type=jnp.float32)
        vh = jnp.dot(v_ref[h], wv, preferred_element_type=jnp.float32)

        # Scores: contract the last dims directly (no .T -> no XLU transpose).
        # The 1/sqrt(D) attention scale is already folded into wq.
        s = lax.dot_general(
            qh.astype(bf16), kh.astype(bf16),
            dimension_numbers=(((1,), (1,)), ((), ())),
            preferred_element_type=jnp.float32)            # (Lq, Lk) f32

        # Numerically-stable softmax in f32 with deferred normalization.
        m = jnp.max(s, axis=-1, keepdims=True)
        p = jnp.exp(s - m)
        denom = jnp.sum(p, axis=-1, keepdims=True)

        oh = jnp.dot(p.astype(bf16), vh.astype(bf16),
                     preferred_element_type=jnp.float32)    # (Lq, D) f32
        oh = oh * pl.reciprocal(denom, approx=True)         # EUP vrcp

        # Fused output projection: head h hits rows h*D:(h+1)*D of Wo^T,
        # indexed on the leading axis of the (H, D, E) weight view
        # (no lane-axis slicing).
        return acc + jnp.dot(oh.astype(bf16), wo_ref[h],
                             preferred_element_type=jnp.float32)

    acc = lax.fori_loop(0, H, head_body,
                        jnp.zeros((Lq, E), jnp.float32), unroll=True)
    o_ref[...] = acc


def multi_head_attention_merged(q, k, v, params, num_heads):
    """q, k, v: (B, L, embed_dim) float32. Returns (B, Lq, embed_dim) float32."""
    B, Lq, E = q.shape
    _, Lk, _ = k.shape
    H = num_heads
    assert E % H == 0, "embed_dim must be divisible by num_heads"
    D = E // H

    f32, bf16 = jnp.float32, jnp.bfloat16
    scale = 1.0 / jnp.sqrt(f32(D))

    # Heads to a leading axis (wrapper-side layout plumbing; mirrors the
    # module's split_into_heads + merge_batch): (B, L, E) -> (B*H, L, D).
    def split_heads(x, L):
        return (x.reshape(B, L, H, D).transpose(0, 2, 1, 3)
                 .reshape(B * H, L, D).astype(bf16))

    q_f = split_heads(q, Lq)
    k_f = split_heads(k, Lk)
    v_f = split_heads(v, Lk)

    # PyTorch Linear stores weight as (out, in); kernel wants (in, out).
    # Shared per-head (D, D) projections stay (D, D); scale folded into Wq.
    wq = (params["wq"].T.astype(f32) * scale).astype(bf16)
    wk = params["wk"].T.astype(bf16)
    wv = params["wv"].T.astype(bf16)
    # Wo^T (in, out) viewed as per-head row blocks: (E, E) -> (H, D, E).
    wo_r = params["wo"].T.astype(bf16).reshape(H, D, E)

    return pl.pallas_call(
        _fused_mha_kernel,
        out_shape=jax.ShapeDtypeStruct((B, Lq, E), jnp.float32),
        grid=(B,),
        in_specs=[
            pl.BlockSpec((H, Lq, D), lambda b: (b, 0, 0)),
            pl.BlockSpec((H, Lk, D), lambda b: (b, 0, 0)),
            pl.BlockSpec((H, Lk, D), lambda b: (b, 0, 0)),
            pl.BlockSpec((D, D), lambda b: (0, 0)),
            pl.BlockSpec((D, D), lambda b: (0, 0)),
            pl.BlockSpec((D, D), lambda b: (0, 0)),
            pl.BlockSpec((H, D, E), lambda b: (0, 0, 0)),
        ],
        out_specs=pl.BlockSpec((pl.Squeezed(), Lq, E), lambda b: (b, 0, 0)),
        compiler_params=pltpu.CompilerParams(
            dimension_semantics=("parallel",),
            vmem_limit_bytes=32 * 1024 * 1024),
    )(q_f, k_f, v_f, wq, wk, wv, wo_r)


def reference(q, k, v, params, num_heads):
    """Pure-JAX f32 reference mirroring the PyTorch forward exactly."""
    B, Lq, E = q.shape
    _, Lk, _ = k.shape
    H = num_heads
    D = E // H

    def split_merge(x, L):
        return x.reshape(B, L, H, D).transpose(0, 2, 1, 3).reshape(B * H, L, D)

    Qf = split_merge(q, Lq) @ params["wq"].T
    Kf = split_merge(k, Lk) @ params["wk"].T
    Vf = split_merge(v, Lk) @ params["wv"].T
    scores = jnp.einsum("bqd,bkd->bqk", Qf, Kf) / jnp.sqrt(jnp.float32(D))
    w = jax.nn.softmax(scores, axis=-1)
    out_flat = jnp.einsum("bqk,bkd->bqd", w, Vf)
    out = out_flat.reshape(B, H, Lq, D).transpose(0, 2, 1, 3).reshape(B, Lq, E)
    return out @ params["wo"].T


if __name__ == "__main__":
    # Small shapes consistent with the module.
    B, L, E, H = 2, 8, 32, 4
    D = E // H

    key = jax.random.PRNGKey(0)
    k_q, k_k, k_v, k_wq, k_wk, k_wv, k_wo = jax.random.split(key, 7)

    q = jax.random.normal(k_q, (B, L, E), dtype=jnp.float32)
    k = jax.random.normal(k_k, (B, L, E), dtype=jnp.float32)
    v = jax.random.normal(k_v, (B, L, E), dtype=jnp.float32)

    # PyTorch Linear weight layout (out_features, in_features).
    params = {
        "wq": jax.random.normal(k_wq, (D, D), dtype=jnp.float32) * 0.1,
        "wk": jax.random.normal(k_wk, (D, D), dtype=jnp.float32) * 0.1,
        "wv": jax.random.normal(k_wv, (D, D), dtype=jnp.float32) * 0.1,
        "wo": jax.random.normal(k_wo, (E, E), dtype=jnp.float32) * 0.1,
    }

    out = multi_head_attention_merged(q, k, v, params, num_heads=H)
    out = jax.block_until_ready(out)

    ref = reference(q, k, v, params, num_heads=H)
    assert out.shape == (B, L, E), out.shape
    # bf16 MXU operands + approx reciprocal -> looser tolerance vs f32 reference.
    assert jnp.allclose(out, ref, atol=2e-2, rtol=2e-2), "mismatch vs reference"

    print("KERNEL_OK")
</pallas_src>

<mosaic_0001>
module attributes {stable_mosaic.version = 11 : i64} {
  func.func @_fused_mha_kernel(%arg0: i32, %arg1: memref<4x8x8xbf16, #tpu.memory_space<vmem>>, %arg2: memref<4x8x8xbf16, #tpu.memory_space<vmem>>, %arg3: memref<4x8x8xbf16, #tpu.memory_space<vmem>>, %arg4: memref<8x8xbf16, #tpu.memory_space<vmem>>, %arg5: memref<8x8xbf16, #tpu.memory_space<vmem>>, %arg6: memref<8x8xbf16, #tpu.memory_space<vmem>>, %arg7: memref<4x8x32xbf16, #tpu.memory_space<vmem>>, %arg8: memref<1x8x32xf32, #tpu.memory_space<vmem>>) attributes {dimension_semantics = [#tpu.dimension_semantics<parallel>], iteration_bounds = array<i64: 2>, scalar_prefetch = 0 : i64, scratch_operands = 0 : i64, tpu.core_type = #tpu.core_type<tc>, window_params = [{transform_indices = @transform_0, window_bounds = array<i64: 4, 8, 8>}, {transform_indices = @transform_1, window_bounds = array<i64: 4, 8, 8>}, {transform_indices = @transform_2, window_bounds = array<i64: 4, 8, 8>}, {pipeline_mode = #tpu.pipeline_mode<synchronous>, transform_indices = @transform_3, window_bounds = array<i64: 8, 8>}, {pipeline_mode = #tpu.pipeline_mode<synchronous>, transform_indices = @transform_4, window_bounds = array<i64: 8, 8>}, {pipeline_mode = #tpu.pipeline_mode<synchronous>, transform_indices = @transform_5, window_bounds = array<i64: 8, 8>}, {pipeline_mode = #tpu.pipeline_mode<synchronous>, transform_indices = @transform_6, window_bounds = array<i64: 4, 8, 32>}, {transform_indices = @transform_7, window_bounds = array<i64: 1, 8, 32>}]} {
    %c0 = arith.constant 0 : index
    %c0_0 = arith.constant 0 : index
    %0 = vector.load %arg4[%c0, %c0_0] : memref<8x8xbf16, #tpu.memory_space<vmem>>, vector<8x8xbf16>
    %c0_1 = arith.constant 0 : index
    %c0_2 = arith.constant 0 : index
    %1 = vector.load %arg5[%c0_1, %c0_2] : memref<8x8xbf16, #tpu.memory_space<vmem>>, vector<8x8xbf16>
    %c0_3 = arith.constant 0 : index
    %c0_4 = arith.constant 0 : index
    %2 = vector.load %arg6[%c0_3, %c0_4] : memref<8x8xbf16, #tpu.memory_space<vmem>>, vector<8x8xbf16>
    %cst = arith.constant 0.000000e+00 : f32
    %3 = vector.broadcast %cst : f32 to vector<8x32xf32>
    %c0_i32 = arith.constant 0 : i32
    %4 = arith.index_cast %c0_i32 : i32 to index
    %c0_5 = arith.constant 0 : index
    %c0_6 = arith.constant 0 : index
    %5 = vector.load %arg1[%4, %c0_5, %c0_6] : memref<4x8x8xbf16, #tpu.memory_space<vmem>>, vector<1x8x8xbf16>
    %6 = vector.shape_cast %5 : vector<1x8x8xbf16> to vector<8x8xbf16>
    %cst_7 = arith.constant dense<0.000000e+00> : vector<8x8xf32>
    %7 = tpu.matmul %6, %0, %cst_7 {dimension_numbers = #tpu.dot_dimension_numbers<[1], [0], [0], [1], [0, 0, 1, 1], [], []>} : vector<8x8xbf16>, vector<8x8xbf16>, vector<8x8xf32> -> vector<8x8xf32>
    %8 = arith.index_cast %c0_i32 : i32 to index
    %c0_8 = arith.constant 0 : index
    %c0_9 = arith.constant 0 : index
    %9 = vector.load %arg2[%8, %c0_8, %c0_9] : memref<4x8x8xbf16, #tpu.memory_space<vmem>>, vector<1x8x8xbf16>
    %10 = vector.shape_cast %9 : vector<1x8x8xbf16> to vector<8x8xbf16>
    %cst_10 = arith.constant dense<0.000000e+00> : vector<8x8xf32>
    %11 = tpu.matmul %10, %1, %cst_10 {dimension_numbers = #tpu.dot_dimension_numbers<[1], [0], [0], [1], [0, 0, 1, 1], [], []>} : vector<8x8xbf16>, vector<8x8xbf16>, vector<8x8xf32> -> vector<8x8xf32>
    %12 = arith.index_cast %c0_i32 : i32 to index
    %c0_11 = arith.constant 0 : index
    %c0_12 = arith.constant 0 : index
    %13 = vector.load %arg3[%12, %c0_11, %c0_12] : memref<4x8x8xbf16, #tpu.memory_space<vmem>>, vector<1x8x8xbf16>
    %14 = vector.shape_cast %13 : vector<1x8x8xbf16> to vector<8x8xbf16>
    %cst_13 = arith.constant dense<0.000000e+00> : vector<8x8xf32>
    %15 = tpu.matmul %14, %2, %cst_13 {dimension_numbers = #tpu.dot_dimension_numbers<[1], [0], [0], [1], [0, 0, 1, 1], [], []>} : vector<8x8xbf16>, vector<8x8xbf16>, vector<8x8xf32> -> vector<8x8xf32>
    %16 = arith.truncf %7 : vector<8x8xf32> to vector<8x8xbf16>
    %17 = arith.truncf %11 : vector<8x8xf32> to vector<8x8xbf16>
    %cst_14 = arith.constant dense<0.000000e+00> : vector<8x8xf32>
    %18 = tpu.matmul %16, %17, %cst_14 {dimension_numbers = #tpu.dot_dimension_numbers<[1], [1], [0], [0], [0, 0, 1, 0], [], []>} : vector<8x8xbf16>, vector<8x8xbf16>, vector<8x8xf32> -> vector<8x8xf32>
    %cst_15 = arith.constant dense<0xFF800000> : vector<8xf32>
    %19 = vector.multi_reduction <maximumf>, %18, %cst_15 [1] : vector<8x8xf32> to vector<8xf32>
    %20 = vector.shape_cast %19 : vector<8xf32> to vector<8x1xf32>
    %21 = vector.broadcast %20 : vector<8x1xf32> to vector<8x8xf32>
    %22 = arith.subf %18, %21 : vector<8x8xf32>
    %23 = math.exp %22 : vector<8x8xf32>
    %cst_16 = arith.constant dense<0.000000e+00> : vector<8xf32>
    %24 = vector.multi_reduction <add>, %23, %cst_16 [1] : vector<8x8xf32> to vector<8xf32>
    %25 = vector.shape_cast %24 : vector<8xf32> to vector<8x1xf32>
    %26 = arith.truncf %23 : vector<8x8xf32> to vector<8x8xbf16>
    %27 = arith.truncf %15 : vector<8x8xf32> to vector<8x8xbf16>
    %cst_17 = arith.constant dense<0.000000e+00> : vector<8x8xf32>
    %28 = tpu.matmul %26, %27, %cst_17 {dimension_numbers = #tpu.dot_dimension_numbers<[1], [0], [0], [1], [0, 0, 1, 1], [], []>} : vector<8x8xbf16>, vector<8x8xbf16>, vector<8x8xf32> -> vector<8x8xf32>
    %29 = tpu.reciprocal %25 {approx = true} : vector<8x1xf32> -> vector<8x1xf32>
    %30 = vector.broadcast %29 : vector<8x1xf32> to vector<8x8xf32>
    %31 = arith.mulf %28, %30 : vector<8x8xf32>
    %32 = arith.truncf %31 : vector<8x8xf32> to vector<8x8xbf16>
    %33 = arith.index_cast %c0_i32 : i32 to index
    %c0_18 = arith.constant 0 : index
    %c0_19 = arith.constant 0 : index
    %34 = vector.load %arg7[%33, %c0_18, %c0_19] : memref<4x8x32xbf16, #tpu.memory_space<vmem>>, vector<1x8x32xbf16>
    %35 = vector.shape_cast %34 : vector<1x8x32xbf16> to vector<8x32xbf16>
    %cst_20 = arith.constant dense<0.000000e+00> : vector<8x32xf32>
    %36 = tpu.matmul %32, %35, %cst_20 {dimension_numbers = #tpu.dot_dimension_numbers<[1], [0], [0], [1], [0, 0, 1, 1], [], []>} : vector<8x8xbf16>, vector<8x32xbf16>, vector<8x32xf32> -> vector<8x32xf32>
    %37 = arith.addf %3, %36 : vector<8x32xf32>
    %c1_i32 = arith.constant 1 : i32
    %38 = arith.index_cast %c1_i32 : i32 to index
    %c0_21 = arith.constant 0 : index
    %c0_22 = arith.constant 0 : index
    %39 = vector.load %arg1[%38, %c0_21, %c0_22] : memref<4x8x8xbf16, #tpu.memory_space<vmem>>, vector<1x8x8xbf16>
    %40 = vector.shape_cast %39 : vector<1x8x8xbf16> to vector<8x8xbf16>
    %cst_23 = arith.constant dense<0.000000e+00> : vector<8x8xf32>
    %41 = tpu.matmul %40, %0, %cst_23 {dimension_numbers = #tpu.dot_dimension_numbers<[1], [0], [0], [1], [0, 0, 1, 1], [], []>} : vector<8x8xbf16>, vector<8x8xbf16>, vector<8x8xf32> -> vector<8x8xf32>
    %42 = arith.index_cast %c1_i32 : i32 to index
    %c0_24 = arith.constant 0 : index
    %c0_25 = arith.constant 0 : index
    %43 = vector.load %arg2[%42, %c0_24, %c0_25] : memref<4x8x8xbf16, #tpu.memory_space<vmem>>, vector<1x8x8xbf16>
    %44 = vector.shape_cast %43 : vector<1x8x8xbf16> to vector<8x8xbf16>
    %cst_26 = arith.constant dense<0.000000e+00> : vector<8x8xf32>
    %45 = tpu.matmul %44, %1, %cst_26 {dimension_numbers = #tpu.dot_dimension_numbers<[1], [0], [0], [1], [0, 0, 1, 1], [], []>} : vector<8x8xbf16>, vector<8x8xbf16>, vector<8x8xf32> -> vector<8x8xf32>
    %46 = arith.index_cast %c1_i32 : i32 to index
    %c0_27 = arith.constant 0 : index
    %c0_28 = arith.constant 0 : index
    %47 = vector.load %arg3[%46, %c0_27, %c0_28] : memref<4x8x8xbf16, #tpu.memory_space<vmem>>, vector<1x8x8xbf16>
    %48 = vector.shape_cast %47 : vector<1x8x8xbf16> to vector<8x8xbf16>
    %cst_29 = arith.constant dense<0.000000e+00> : vector<8x8xf32>
    %49 = tpu.matmul %48, %2, %cst_29 {dimension_numbers = #tpu.dot_dimension_numbers<[1], [0], [0], [1], [0, 0, 1, 1], [], []>} : vector<8x8xbf16>, vector<8x8xbf16>, vector<8x8xf32> -> vector<8x8xf32>
    %50 = arith.truncf %41 : vector<8x8xf32> to vector<8x8xbf16>
    %51 = arith.truncf %45 : vector<8x8xf32> to vector<8x8xbf16>
    %cst_30 = arith.constant dense<0.000000e+00> : vector<8x8xf32>
    %52 = tpu.matmul %50, %51, %cst_30 {dimension_numbers = #tpu.dot_dimension_numbers<[1], [1], [0], [0], [0, 0, 1, 0], [], []>} : vector<8x8xbf16>, vector<8x8xbf16>, vector<8x8xf32> -> vector<8x8xf32>
    %cst_31 = arith.constant dense<0xFF800000> : vector<8xf32>
    %53 = vector.multi_reduction <maximumf>, %52, %cst_31 [1] : vector<8x8xf32> to vector<8xf32>
    %54 = vector.shape_cast %53 : vector<8xf32> to vector<8x1xf32>
    %55 = vector.broadcast %54 : vector<8x1xf32> to vector<8x8xf32>
    %56 = arith.subf %52, %55 : vector<8x8xf32>
    %57 = math.exp %56 : vector<8x8xf32>
    %cst_32 = arith.constant dense<0.000000e+00> : vector<8xf32>
    %58 = vector.multi_reduction <add>, %57, %cst_32 [1] : vector<8x8xf32> to vector<8xf32>
    %59 = vector.shape_cast %58 : vector<8xf32> to vector<8x1xf32>
    %60 = arith.truncf %57 : vector<8x8xf32> to vector<8x8xbf16>
    %61 = arith.truncf %49 : vector<8x8xf32> to vector<8x8xbf16>
    %cst_33 = arith.constant dense<0.000000e+00> : vector<8x8xf32>
    %62 = tpu.matmul %60, %61, %cst_33 {dimension_numbers = #tpu.dot_dimension_numbers<[1], [0], [0], [1], [0, 0, 1, 1], [], []>} : vector<8x8xbf16>, vector<8x8xbf16>, vector<8x8xf32> -> vector<8x8xf32>
    %63 = tpu.reciprocal %59 {approx = true} : vector<8x1xf32> -> vector<8x1xf32>
    %64 = vector.broadcast %63 : vector<8x1xf32> to vector<8x8xf32>
    %65 = arith.mulf %62, %64 : vector<8x8xf32>
    %66 = arith.truncf %65 : vector<8x8xf32> to vector<8x8xbf16>
    %67 = arith.index_cast %c1_i32 : i32 to index
    %c0_34 = arith.constant 0 : index
    %c0_35 = arith.constant 0 : index
    %68 = vector.load %arg7[%67, %c0_34, %c0_35] : memref<4x8x32xbf16, #tpu.memory_space<vmem>>, vector<1x8x32xbf16>
    %69 = vector.shape_cast %68 : vector<1x8x32xbf16> to vector<8x32xbf16>
    %cst_36 = arith.constant dense<0.000000e+00> : vector<8x32xf32>
    %70 = tpu.matmul %66, %69, %cst_36 {dimension_numbers = #tpu.dot_dimension_numbers<[1], [0], [0], [1], [0, 0, 1, 1], [], []>} : vector<8x8xbf16>, vector<8x32xbf16>, vector<8x32xf32> -> vector<8x32xf32>
    %71 = arith.addf %37, %70 : vector<8x32xf32>
    %c2_i32 = arith.constant 2 : i32
    %72 = arith.index_cast %c2_i32 : i32 to index
    %c0_37 = arith.constant 0 : index
    %c0_38 = arith.constant 0 : index
    %73 = vector.load %arg1[%72, %c0_37, %c0_38] : memref<4x8x8xbf16, #tpu.memory_space<vmem>>, vector<1x8x8xbf16>
    %74 = vector.shape_cast %73 : vector<1x8x8xbf16> to vector<8x8xbf16>
    %cst_39 = arith.constant dense<0.000000e+00> : vector<8x8xf32>
    %75 = tpu.matmul %74, %0, %cst_39 {dimension_numbers = #tpu.dot_dimension_numbers<[1], [0], [0], [1], [0, 0, 1, 1], [], []>} : vector<8x8xbf16>, vector<8x8xbf16>, vector<8x8xf32> -> vector<8x8xf32>
    %76 = arith.index_cast %c2_i32 : i32 to index
    %c0_40 = arith.constant 0 : index
    %c0_41 = arith.constant 0 : index
    %77 = vector.load %arg2[%76, %c0_40, %c0_41] : memref<4x8x8xbf16, #tpu.memory_space<vmem>>, vector<1x8x8xbf16>
    %78 = vector.shape_cast %77 : vector<1x8x8xbf16> to vector<8x8xbf16>
    %cst_42 = arith.constant dense<0.000000e+00> : vector<8x8xf32>
    %79 = tpu.matmul %78, %1, %cst_42 {dimension_numbers = #tpu.dot_dimension_numbers<[1], [0], [0], [1], [0, 0, 1, 1], [], []>} : vector<8x8xbf16>, vector<8x8xbf16>, vector<8x8xf32> -> vector<8x8xf32>
    %80 = arith.index_cast %c2_i32 : i32 to index
    %c0_43 = arith.constant 0 : index
    %c0_44 = arith.constant 0 : index
    %81 = vector.load %arg3[%80, %c0_43, %c0_44] : memref<4x8x8xbf16, #tpu.memory_space<vmem>>, vector<1x8x8xbf16>
    %82 = vector.shape_cast %81 : vector<1x8x8xbf16> to vector<8x8xbf16>
    %cst_45 = arith.constant dense<0.000000e+00> : vector<8x8xf32>
    %83 = tpu.matmul %82, %2, %cst_45 {dimension_numbers = #tpu.dot_dimension_numbers<[1], [0], [0], [1], [0, 0, 1, 1], [], []>} : vector<8x8xbf16>, vector<8x8xbf16>, vector<8x8xf32> -> vector<8x8xf32>
    %84 = arith.truncf %75 : vector<8x8xf32> to vector<8x8xbf16>
    %85 = arith.truncf %79 : vector<8x8xf32> to vector<8x8xbf16>
    %cst_46 = arith.constant dense<0.000000e+00> : vector<8x8xf32>
    %86 = tpu.matmul %84, %85, %cst_46 {dimension_numbers = #tpu.dot_dimension_numbers<[1], [1], [0], [0], [0, 0, 1, 0], [], []>} : vector<8x8xbf16>, vector<8x8xbf16>, vector<8x8xf32> -> vector<8x8xf32>
    %cst_47 = arith.constant dense<0xFF800000> : vector<8xf32>
    %87 = vector.multi_reduction <maximumf>, %86, %cst_47 [1] : vector<8x8xf32> to vector<8xf32>
    %88 = vector.shape_cast %87 : vector<8xf32> to vector<8x1xf32>
    %89 = vector.broadcast %88 : vector<8x1xf32> to vector<8x8xf32>
    %90 = arith.subf %86, %89 : vector<8x8xf32>
    %91 = math.exp %90 : vector<8x8xf32>
    %cst_48 = arith.constant dense<0.000000e+00> : vector<8xf32>
    %92 = vector.multi_reduction <add>, %91, %cst_48 [1] : vector<8x8xf32> to vector<8xf32>
    %93 = vector.shape_cast %92 : vector<8xf32> to vector<8x1xf32>
    %94 = arith.truncf %91 : vector<8x8xf32> to vector<8x8xbf16>
    %95 = arith.truncf %83 : vector<8x8xf32> to vector<8x8xbf16>
    %cst_49 = arith.constant dense<0.000000e+00> : vector<8x8xf32>
    %96 = tpu.matmul %94, %95, %cst_49 {dimension_numbers = #tpu.dot_dimension_numbers<[1], [0], [0], [1], [0, 0, 1, 1], [], []>} : vector<8x8xbf16>, vector<8x8xbf16>, vector<8x8xf32> -> vector<8x8xf32>
    %97 = tpu.reciprocal %93 {approx = true} : vector<8x1xf32> -> vector<8x1xf32>
    %98 = vector.broadcast %97 : vector<8x1xf32> to vector<8x8xf32>
    %99 = arith.mulf %96, %98 : vector<8x8xf32>
    %100 = arith.truncf %99 : vector<8x8xf32> to vector<8x8xbf16>
    %101 = arith.index_cast %c2_i32 : i32 to index
    %c0_50 = arith.constant 0 : index
    %c0_51 = arith.constant 0 : index
    %102 = vector.load %arg7[%101, %c0_50, %c0_51] : memref<4x8x32xbf16, #tpu.memory_space<vmem>>, vector<1x8x32xbf16>
    %103 = vector.shape_cast %102 : vector<1x8x32xbf16> to vector<8x32xbf16>
    %cst_52 = arith.constant dense<0.000000e+00> : vector<8x32xf32>
    %104 = tpu.matmul %100, %103, %cst_52 {dimension_numbers = #tpu.dot_dimension_numbers<[1], [0], [0], [1], [0, 0, 1, 1], [], []>} : vector<8x8xbf16>, vector<8x32xbf16>, vector<8x32xf32> -> vector<8x32xf32>
    %105 = arith.addf %71, %104 : vector<8x32xf32>
    %c3_i32 = arith.constant 3 : i32
    %106 = arith.index_cast %c3_i32 : i32 to index
    %c0_53 = arith.constant 0 : index
    %c0_54 = arith.constant 0 : index
    %107 = vector.load %arg1[%106, %c0_53, %c0_54] : memref<4x8x8xbf16, #tpu.memory_space<vmem>>, vector<1x8x8xbf16>
    %108 = vector.shape_cast %107 : vector<1x8x8xbf16> to vector<8x8xbf16>
    %cst_55 = arith.constant dense<0.000000e+00> : vector<8x8xf32>
    %109 = tpu.matmul %108, %0, %cst_55 {dimension_numbers = #tpu.dot_dimension_numbers<[1], [0], [0], [1], [0, 0, 1, 1], [], []>} : vector<8x8xbf16>, vector<8x8xbf16>, vector<8x8xf32> -> vector<8x8xf32>
    %110 = arith.index_cast %c3_i32 : i32 to index
    %c0_56 = arith.constant 0 : index
    %c0_57 = arith.constant 0 : index
    %111 = vector.load %arg2[%110, %c0_56, %c0_57] : memref<4x8x8xbf16, #tpu.memory_space<vmem>>, vector<1x8x8xbf16>
    %112 = vector.shape_cast %111 : vector<1x8x8xbf16> to vector<8x8xbf16>
    %cst_58 = arith.constant dense<0.000000e+00> : vector<8x8xf32>
    %113 = tpu.matmul %112, %1, %cst_58 {dimension_numbers = #tpu.dot_dimension_numbers<[1], [0], [0], [1], [0, 0, 1, 1], [], []>} : vector<8x8xbf16>, vector<8x8xbf16>, vector<8x8xf32> -> vector<8x8xf32>
    %114 = arith.index_cast %c3_i32 : i32 to index
    %c0_59 = arith.constant 0 : index
    %c0_60 = arith.constant 0 : index
    %115 = vector.load %arg3[%114, %c0_59, %c0_60] : memref<4x8x8xbf16, #tpu.memory_space<vmem>>, vector<1x8x8xbf16>
    %116 = vector.shape_cast %115 : vector<1x8x8xbf16> to vector<8x8xbf16>
    %cst_61 = arith.constant dense<0.000000e+00> : vector<8x8xf32>
    %117 = tpu.matmul %116, %2, %cst_61 {dimension_numbers = #tpu.dot_dimension_numbers<[1], [0], [0], [1], [0, 0, 1, 1], [], []>} : vector<8x8xbf16>, vector<8x8xbf16>, vector<8x8xf32> -> vector<8x8xf32>
    %118 = arith.truncf %109 : vector<8x8xf32> to vector<8x8xbf16>
    %119 = arith.truncf %113 : vector<8x8xf32> to vector<8x8xbf16>
    %cst_62 = arith.constant dense<0.000000e+00> : vector<8x8xf32>
    %120 = tpu.matmul %118, %119, %cst_62 {dimension_numbers = #tpu.dot_dimension_numbers<[1], [1], [0], [0], [0, 0, 1, 0], [], []>} : vector<8x8xbf16>, vector<8x8xbf16>, vector<8x8xf32> -> vector<8x8xf32>
    %cst_63 = arith.constant dense<0xFF800000> : vector<8xf32>
    %121 = vector.multi_reduction <maximumf>, %120, %cst_63 [1] : vector<8x8xf32> to vector<8xf32>
    %122 = vector.shape_cast %121 : vector<8xf32> to vector<8x1xf32>
    %123 = vector.broadcast %122 : vector<8x1xf32> to vector<8x8xf32>
    %124 = arith.subf %120, %123 : vector<8x8xf32>
    %125 = math.exp %124 : vector<8x8xf32>
    %cst_64 = arith.constant dense<0.000000e+00> : vector<8xf32>
    %126 = vector.multi_reduction <add>, %125, %cst_64 [1] : vector<8x8xf32> to vector<8xf32>
    %127 = vector.shape_cast %126 : vector<8xf32> to vector<8x1xf32>
    %128 = arith.truncf %125 : vector<8x8xf32> to vector<8x8xbf16>
    %129 = arith.truncf %117 : vector<8x8xf32> to vector<8x8xbf16>
    %cst_65 = arith.constant dense<0.000000e+00> : vector<8x8xf32>
    %130 = tpu.matmul %128, %129, %cst_65 {dimension_numbers = #tpu.dot_dimension_numbers<[1], [0], [0], [1], [0, 0, 1, 1], [], []>} : vector<8x8xbf16>, vector<8x8xbf16>, vector<8x8xf32> -> vector<8x8xf32>
    %131 = tpu.reciprocal %127 {approx = true} : vector<8x1xf32> -> vector<8x1xf32>
    %132 = vector.broadcast %131 : vector<8x1xf32> to vector<8x8xf32>
    %133 = arith.mulf %130, %132 : vector<8x8xf32>
    %134 = arith.truncf %133 : vector<8x8xf32> to vector<8x8xbf16>
    %135 = arith.index_cast %c3_i32 : i32 to index
    %c0_66 = arith.constant 0 : index
    %c0_67 = arith.constant 0 : index
    %136 = vector.load %arg7[%135, %c0_66, %c0_67] : memref<4x8x32xbf16, #tpu.memory_space<vmem>>, vector<1x8x32xbf16>
    %137 = vector.shape_cast %136 : vector<1x8x32xbf16> to vector<8x32xbf16>
    %cst_68 = arith.constant dense<0.000000e+00> : vector<8x32xf32>
    %138 = tpu.matmul %134, %137, %cst_68 {dimension_numbers = #tpu.dot_dimension_numbers<[1], [0], [0], [1], [0, 0, 1, 1], [], []>} : vector<8x8xbf16>, vector<8x32xbf16>, vector<8x32xf32> -> vector<8x32xf32>
    %139 = arith.addf %105, %138 : vector<8x32xf32>
    %c4_i32 = arith.constant 4 : i32
    %c0_69 = arith.constant 0 : index
    %c0_70 = arith.constant 0 : index
    %c0_71 = arith.constant 0 : index
    %140 = vector.load %arg8[%c0_69, %c0_70, %c0_71] : memref<1x8x32xf32, #tpu.memory_space<vmem>>, vector<1x8x32xf32>
    %141 = vector.shape_cast %140 : vector<1x8x32xf32> to vector<8x32xf32>
    %142 = vector.shape_cast %139 : vector<8x32xf32> to vector<1x8x32xf32>
    tpu.vector_store %arg8[%c0_69, %c0_70, %c0_71], %142 {strides = array<i32>} : memref<1x8x32xf32, #tpu.memory_space<vmem>>, vector<1x8x32xf32>,
    return
  }
  func.func @transform_0(%arg0: i32) -> (i32, i32, i32) {
    %c0_i32 = arith.constant 0 : i32
    %c0_i32_0 = arith.constant 0 : i32
    %c0_i32_1 = arith.constant 0 : i32
    return %arg0, %c0_i32, %c0_i32_0 : i32, i32, i32
  }
  func.func @transform_1(%arg0: i32) -> (i32, i32, i32) {
    %c0_i32 = arith.constant 0 : i32
    %c0_i32_0 = arith.constant 0 : i32
    %c0_i32_1 = arith.constant 0 : i32
    return %arg0, %c0_i32, %c0_i32_0 : i32, i32, i32
  }
  func.func @transform_2(%arg0: i32) -> (i32, i32, i32) {
    %c0_i32 = arith.constant 0 : i32
    %c0_i32_0 = arith.constant 0 : i32
    %c0_i32_1 = arith.constant 0 : i32
    return %arg0, %c0_i32, %c0_i32_0 : i32, i32, i32
  }
  func.func @transform_3(%arg0: i32) -> (i32, i32) {
    %c0_i32 = arith.constant 0 : i32
    %c0_i32_0 = arith.constant 0 : i32
    %c0_i32_1 = arith.constant 0 : i32
    return %c0_i32, %c0_i32_0 : i32, i32
  }
  func.func @transform_4(%arg0: i32) -> (i32, i32) {
    %c0_i32 = arith.constant 0 : i32
    %c0_i32_0 = arith.constant 0 : i32
    %c0_i32_1 = arith.constant 0 : i32
    return %c0_i32, %c0_i32_0 : i32, i32
  }
  func.func @transform_5(%arg0: i32) -> (i32, i32) {
    %c0_i32 = arith.constant 0 : i32
    %c0_i32_0 = arith.constant 0 : i32
    %c0_i32_1 = arith.constant 0 : i32
    return %c0_i32, %c0_i32_0 : i32, i32
  }
  func.func @transform_6(%arg0: i32) -> (i32, i32, i32) {
    %c0_i32 = arith.constant 0 : i32
    %c0_i32_0 = arith.constant 0 : i32
    %c0_i32_1 = arith.constant 0 : i32
    %c0_i32_2 = arith.constant 0 : i32
    return %c0_i32, %c0_i32_0, %c0_i32_1 : i32, i32, i32
  }
  func.func @transform_7(%arg0: i32) -> (i32, i32, i32) {
    %c0_i32 = arith.constant 0 : i32
    %c0_i32_0 = arith.constant 0 : i32
    %c0_i32_1 = arith.constant 0 : i32
    return %arg0, %c0_i32, %c0_i32_0 : i32, i32, i32
  }
}

</mosaic_0001>

<bundles_post_ra>
// kernel: tpu_custom_call.1
= control target key start
LH: loop header
LB: loop body
LE: loop exit
PB: predicated region body
PF: predicated region fallthrough
CT: control target
= control target key end

     0   :  { %s2786_s0 = inlined_call_operand.hbm [shape: bf16[8,8,8], index: 0, kind: input, shape index: {}]   ;;  %s2787_s1 = inlined_call_operand.hbm [shape: bf16[8,8,8], index: 1, kind: input, shape index: {}]   ;;  %s2788_s2 = inlined_call_operand.hbm [shape: bf16[8,8,8], index: 2, kind: input, shape index: {}]   ;;  %s2789_s3 = inlined_call_operand.vmem [shape: bf16[8,8], index: 3, kind: input, shape index: {}]   ;;  %s2790_s4 = inlined_call_operand.hbm [shape: bf16[8,8], index: 4, kind: input, shape index: {}]   ;;  %s2791_s5 = inlined_call_operand.vmem [shape: bf16[8,8], index: 5, kind: input, shape index: {}]   ;;  %s2792_s6 = inlined_call_operand.hbm [shape: bf16[4,8,32], index: 6, kind: input, shape index: {}]   ;;  %s2793_s7 = inlined_call_operand.hbm [shape: f32[2,8,32], index: 7, kind: output, shape index: {}]  }
   0x1   :  { %2807 = sst [smem:[#allocation19_spill]] %s2786_s0 }
   0x2   :  { %2808 = sst [smem:[#allocation20_spill]] %s2787_s1 }
   0x3   :  { %2809 = sst [smem:[#allocation21_spill]] %s2790_s4 }
   0x4   :  { %12 = vsyncpa [#allocation3], 0 }
   0x5   :  { %14 = vsyncpa [#allocation3 + $0x1], 0 }
   0x6   :  { %15 = vsyncpa [#allocation6], 0 }
   0x7   :  { %17 = vsyncpa [#allocation6 + $0x1], 0 }
   0x8   :  { %18 = vsyncpa [#allocation9], 0 }
   0x9   :  { %19 = vsyncpa [#allocation4], 0 }
   0xa   :  { %21 = vsyncpa [#allocation4 + $0x1], 0  ;;  %s2339_s24 = smov 0   ;;  %s2341_s25 = smov 0  }
   0xb   :  { %s2343_s26 = smov 0   ;;  %s2345_s27 = smov 0  }
   0xc LB: > { %2810 = sst [smem:[#allocation16_spill]] %s2287_s27  ;;  %s2360_s28 = sadd.s32 4294967295, %s2287_s27   ;;  %s2287_s27 = sphi %s2345_s27, %s2837_s27   ;;  %s2283_s26 = sphi %s2343_s26, %s2841_s26   ;;  %s2279_s25 = sphi %s2341_s25, %s2840_s25   ;;  %s2275_s24 = sphi %s2339_s24, %s2839_s24  }
   0xd   : > { %s1729_s29 = sadd.s32 4294967294, %s2287_s27   ;;  %s2364_s30 = sadd.s32 1, %s2287_s27  }
   0xe   : > { %2811 = sst [smem:[#allocation17_spill]] %s2364_s30  ;;  %s34_s8 = sadd.s32 1, %s2283_s26 }
   0xf   : > { %s31_s9 = ssub.s32 %s2287_s27, %s2364_s30  ;;  %p41_p0 = scmp.ne.s32.totalorder %s2283_s26, %s2279_s25 }
  0x10   : > { %p32_p1 = scmp.eq.s32.totalorder %s31_s9, 0  ;;  %p42_p2 = scmp.eq.s32.totalorder %s2287_s27, 0 }
  0x11   : > { %p47_p3 = scmp.ne.s32.totalorder %s2279_s25, %s2275_s24  ;;  %p2794_p4 = scmp.eq.s32.totalorder %s2360_s28, 0 }
  0x12   : > { %s2376_s10 = scalar_select %p32_p1, %s2283_s26, %s34_s8  }
  0x13   : > { %p2378_p5 = por %p42_p2, %p41_p0  ;;  %p2384_p6 = por %p2794_p4, %p47_p3 }
  0x14   : > { %2812 = sst [smem:[#allocation18_spill]] %s2376_s10  ;;  %p207_p7 = scmp.eq.s32.totalorder %s2360_s28, 1 }
  0x15   : > { %s2814_s12 = scalar_select %p2384_p6, 1, 0 }
  0x16   : > { %p213_p8 = scmp.eq.s32.totalorder %s1729_s29, 1  ;;  %p1730_p9 = scmp.ge.s32.totalorder %s2287_s27, 1 }
  0x17   : > { %p220_p10 = scmp.lt.s32.totalorder %s2287_s27, 3  ;;  %p2391_p11 = por %p207_p7, %p41_p0 }
  0x18   : > { %p2395_p12 = por %p213_p8, %p47_p3  ;;  %s2289_s16 = smov [#allocation8]  }
  0x19   : > { %s2815_s13 = scalar_select %p2391_p11, 1, 0 }
  0x1a   : > { %s2816_s14 = scalar_select %p2395_p12, 1, 0 }
  0x1b   : > { %p2399_p13 = pnand %p1730_p9, %p220_p10  ;;  %s236_s17 = sshll.u32 %s2289_s16, 4  ;;  %s237_s17 = int_to_ptr.vmem [resolvable:$true] %s236_s17 }
  0x1c   : > { %p2021_p4 = scmp.lt.s32.totalorder %s2287_s27, 2  ;;  %p2818_p0 = scmp.eq.s32.totalorder %s2360_s28, 0 }
  0x1d   : > { %s2817_s15 = scalar_select %p2399_p13, 1, 0 }
  0x1e   : > { %p1998_p2 = pneg %p2399_p13  ;;  %p2415_p3 = pnand %p2021_p4, %p2378_p5 }
  0x1f   : > { %s2796_s20 = sand.u32 1, %s2283_s26   ;;  %s2090_s21 = scalar_lea.vmem %s237_s17, 64 }
  0x20   : > { %p2409_p7 = pnand %p1998_p2, %p2818_p0  ;;  %p2091_p9 = scmp.ne.s32.totalorder %s237_s17, %s2090_s21 }
  0x21   : > { %p2098_p2 = scmp.lt.s32.totalorder %s237_s17, %s237_s17  ;;  %p2099_p0 = scmp.lt.s32.totalorder %s2090_s21, %s2090_s21 }
  0x22   : > { %s2819_s18 = scalar_select %p2409_p7, 1, 0 }
  0x23   : > { %p2800_p8 = pneg %p2409_p7  ;;  %p2100_p12 = por %p2099_p0, %p2098_p2 }
  0x25   : > { %p2093_p10 = pnand %p2091_p9, %p2800_p8 }
  0x27   : > { %p2094_p1 = pneg %p2093_p10 }
  0x29   : > { %p2101_p11 = pnand %p2100_p12, %p2094_p1 }
  0x2b   : > { %2104 = shalt.err (!%p2101_p11)
}
  0x2c   : > { %s2821_s4 = sld [smem:[#allocation21_spill]]  ;;  %s2432_s29 = sshll.u32 %s2796_s20, 4 }
  0x2d   : > { %s2435_s8 = sshll.u32 %s2287_s27, 8  ;;  %s284_s9 = sand.u32 1, %s2287_s27  }
  0x2e   : > { %s2822_s1 = sld [smem:[#allocation20_spill]]  ;;  %s288_s22 = scalar_lea.vmem [#allocation5], %s2432_s29 }
  0x2f   : > { %s295_s23 = sshll.u32 %s288_s22, 4  ;;  %p2453_p5 = pneg %p2415_p3  ;;  %s2445_s23 = int_to_ptr.vmem [resolvable:$true] %s295_s23 }
  0x32   : > { %2001 = dma.hbm_to_vmem [thread:$0]  (!%p2409_p7), %s2821_s4, 64, %s237_s17, [#allocation9]  }
  0x33   : > { %s2447_s17 = scalar_lea.sflag [#allocation6], %s284_s9 }
  0x34   : > { %s2442_s21 = scalar_lea.hbm %s2822_s1, %s2435_s8  ;;  %s2110_s10 = scalar_lea.hbm %s2822_s1, 512 }
  0x35   : > { %s2105_s20 = scalar_lea.hbm %s2442_s21, 256  ;;  %p2111_p1 = scmp.lt.s32.totalorder %s2442_s21, %s2822_s1 }
  0x36   : > { %p2106_p4 = scmp.ne.s32.totalorder %s2442_s21, %s2105_s20  ;;  %p2112_p9 = scmp.lt.s32.totalorder %s2110_s10, %s2105_s20 }
  0x38   : > { %p2108_p11 = pnand %p2453_p5, %p2106_p4  ;;  %p2113_p10 = por %p2112_p9, %p2111_p1 }
  0x3a   : > { %p2109_p12 = pneg %p2108_p11 }
  0x3c   : > { %p2114_p2 = pnand %p2113_p10, %p2109_p12 }
  0x3e   : > { %2117 = shalt.err (!%p2114_p2)
}
  0x3f   : > { %s2118_s9 = scalar_lea.vmem %s2445_s23, 256  ;;  %s2290_s27 = smov [#allocation5]  }
  0x40   : > { %p2119_p0 = scmp.ne.s32.totalorder %s2445_s23, %s2118_s9  ;;  %s2123_s11 = sshll.u32 %s2290_s27, 4  ;;  %s2124_s11 = int_to_ptr.vmem [resolvable:$false] %s2123_s11 }
  0x41   : > { %s2125_s16 = scalar_lea.vmem %s2124_s11, 512  ;;  %p2126_p8 = scmp.lt.s32.totalorder %s2445_s23, %s2124_s11 }
  0x42   : > { %p2121_p4 = pnand %p2119_p0, %p2453_p5  ;;  %p2127_p6 = scmp.lt.s32.totalorder %s2125_s16, %s2118_s9 }
  0x44   : > { %p2122_p11 = pneg %p2121_p4  ;;  %p2128_p13 = por %p2127_p6, %p2126_p8 }
  0x46   : > { %p2129_p7 = pnand %p2128_p13, %p2122_p11 }
  0x48   : > { %2132 = shalt.err (!%p2129_p7)
}
  0x49   : > { %s2805_s30 = smov 64   ;;  %s2292_s10 = smov 4  }
  0x4a   : > { %2011 = dma.hbm_to_vmem [thread:$0]  (!%p2415_p3), %s2442_s21, 256, %s2445_s23, %s2447_s17, %s2805_s30, %s2805_s30, %s2292_s10  }
  0x4b   : > { %s2293_s27 = smov [#allocation10]   ;;  %p2824_p6 = scmp.ne.s32.totalorder %s2819_s18, 0 }
  0x4c   : > { %s249_s20 = sshll.u32 %s2293_s27, 4  ;;  %s250_s20 = int_to_ptr.vmem [resolvable:$true] %s249_s20 }
  0x4d   : > { %s2144_s22 = scalar_lea.vmem %s250_s20, 256  ;;  %p2825_p13 = pneg %p2824_p6 }
  0x4e   : > { %p2145_p12 = scmp.ne.s32.totalorder %s250_s20, %s2144_s22  ;;  %p2152_p1 = scmp.lt.s32.totalorder %s250_s20, %s250_s20 }
  0x4f   : > { %p2153_p9 = scmp.lt.s32.totalorder %s2144_s22, %s2144_s22 }
  0x50   : > { %p2147_p7 = pnand %p2145_p12, %p2825_p13 }
  0x51   : > { %p2154_p10 = por %p2153_p9, %p2152_p1 }
  0x52   : > { %p2148_p8 = pneg %p2147_p7 }
  0x54   : > { %p2155_p2 = pnand %p2154_p10, %p2148_p8 }
  0x56   : > { %2158 = shalt.err (!%p2155_p2)
}
  0x57   : > { %2004 = dma.hbm_to_vmem [thread:$0]  (!%p2824_p6), %s2792_s6, 256, %s250_s20, [#allocation9], %s2805_s30, %s2805_s30, %s2292_s10  }
  0x58   : > { %s2826_s0 = sld [smem:[#allocation19_spill]]  ;;  %s267_s18 = scalar_lea.vmem [#allocation2], %s2432_s29 }
  0x59   : > { %s274_s27 = sshll.u32 %s267_s18, 4  ;;  %s2827_s22 = sand.u32 1, %s2283_s26   ;;  %s2497_s27 = int_to_ptr.vmem [resolvable:$true] %s274_s27 }
  0x5a   : > { %s264_s1 = scalar_lea.sflag [#allocation3], %s2827_s22 }
  0x5e   : > { %s2494_s16 = scalar_lea.hbm %s2826_s0, %s2435_s8  ;;  %s2164_s9 = scalar_lea.hbm %s2826_s0, 512 }
  0x5f   : > { %s2159_s21 = scalar_lea.hbm %s2494_s16, 256  ;;  %p2165_p12 = scmp.lt.s32.totalorder %s2494_s16, %s2826_s0 }
  0x60   : > { %p2160_p0 = scmp.ne.s32.totalorder %s2494_s16, %s2159_s21  ;;  %p2166_p6 = scmp.lt.s32.totalorder %s2164_s9, %s2159_s21 }
  0x62   : > { %p2162_p4 = pnand %p2160_p0, %p2453_p5  ;;  %p2167_p13 = por %p2166_p6, %p2165_p12 }
  0x64   : > { %p2163_p11 = pneg %p2162_p4 }
  0x66   : > { %p2168_p7 = pnand %p2167_p13, %p2163_p11 }
  0x68   : > { %2171 = shalt.err (!%p2168_p7)
}
  0x69   : > { %s2172_s18 = scalar_lea.vmem %s2497_s27, 256  ;;  %s2294_s22 = smov [#allocation2]  }
  0x6a   : > { %p2173_p8 = scmp.ne.s32.totalorder %s2497_s27, %s2172_s18  ;;  %s2177_s20 = sshll.u32 %s2294_s22, 4  ;;  %s2178_s20 = int_to_ptr.vmem [resolvable:$false] %s2177_s20 }
  0x6b   : > { %s2179_s23 = scalar_lea.vmem %s2178_s20, 512  ;;  %p2180_p10 = scmp.lt.s32.totalorder %s2497_s27, %s2178_s20 }
  0x6c   : > { %p2175_p1 = pnand %p2173_p8, %p2453_p5  ;;  %p2181_p2 = scmp.lt.s32.totalorder %s2179_s23, %s2172_s18 }
  0x6e   : > { %p2176_p9 = pneg %p2175_p1  ;;  %p2182_p0 = por %p2181_p2, %p2180_p10 }
  0x70   : > { %p2183_p4 = pnand %p2182_p0, %p2176_p9 }
  0x72   : > { %2186 = shalt.err (!%p2183_p4)
}
  0x73   : > { %s2828_s30 = smov 64   ;;  %s2528_s11 = scalar_lea.hbm %s2788_s2, %s2435_s8 }
  0x74   : > { %2008 = dma.hbm_to_vmem [thread:$0]  (!%p2415_p3), %s2494_s16, 256, %s2497_s27, %s264_s1, %s2828_s30, %s2828_s30, %s2292_s10  }
  0x75   : > { %s309_s18 = scalar_lea.vmem [#allocation7], %s2432_s29  ;;  %s2187_s20 = scalar_lea.hbm %s2528_s11, 256 }
  0x76   : > { %s316_s22 = sshll.u32 %s309_s18, 4  ;;  %p2188_p11 = scmp.ne.s32.totalorder %s2528_s11, %s2187_s20  ;;  %s317_s22 = int_to_ptr.vmem [resolvable:$true] %s316_s22 }
  0x77   : > { %s2192_s1 = scalar_lea.hbm %s2788_s2, 512  ;;  %p2193_p13 = scmp.lt.s32.totalorder %s2528_s11, %s2788_s2 }
  0x78   : > { %p2190_p12 = pnand %p2188_p11, %p2453_p5  ;;  %p2194_p7 = scmp.lt.s32.totalorder %s2192_s1, %s2187_s20 }
  0x7a   : > { %p2191_p6 = pneg %p2190_p12  ;;  %p2195_p8 = por %p2194_p7, %p2193_p13 }
  0x7c   : > { %p2196_p1 = pnand %p2195_p8, %p2191_p6 }
  0x7e   : > { %2199 = shalt.err (!%p2196_p1)
}
  0x7f   : > { %s2200_s29 = scalar_lea.vmem %s317_s22, 256  ;;  %s2295_s8 = smov [#allocation7]  }
  0x80   : > { %p2201_p9 = scmp.ne.s32.totalorder %s317_s22, %s2200_s29  ;;  %s2205_s21 = sshll.u32 %s2295_s8, 4  ;;  %s2206_s21 = int_to_ptr.vmem [resolvable:$false] %s2205_s21 }
  0x81   : > { %s2207_s9 = scalar_lea.vmem %s2206_s21, 512  ;;  %p2208_p0 = scmp.lt.s32.totalorder %s317_s22, %s2206_s21 }
  0x82   : > { %p2203_p10 = pnand %p2201_p9, %p2453_p5  ;;  %p2209_p4 = scmp.lt.s32.totalorder %s2207_s9, %s2200_s29 }
  0x84   : > { %p2204_p2 = pneg %p2203_p10  ;;  %p2210_p11 = por %p2209_p4, %p2208_p0 }
  0x86   : > { %p2211_p12 = pnand %p2210_p11, %p2204_p2 }
  0x88   : > { %2214 = shalt.err (!%p2211_p12)
}
  0x89   : > { %2014 = dma.hbm_to_vmem [thread:$0]  (!%p2415_p3), %s2528_s11, 256, %s317_s22, %s2447_s17, %s2828_s30, %s2828_s30, %s2292_s10  }
  0x8a   : > { %p2829_p5 = scmp.ne.s32.totalorder %s2817_s15, 0 }
  0x8b   : > { %s2554_s0 = sand.u32 (!%p2829_p5), 1, %s2279_s25   ;;  %p2830_p6 = scmp.ne.s32.totalorder (!%p2829_p5), %s2814_s12, 0 }
  0x8c   : > { %328 = sbr.rel (%p2829_p5) target bundleno = 3194 (0xc7a), region = 48  ;;  %s1744_s4 = sshll.u32 (!%p2829_p5), %s2554_s0, 4 }
  0x8d   : > { %s331_s18 = scalar_lea.sflag (!%p2829_p5), [#allocation3], %s2554_s0  ;;  %s2558_s20 = scalar_lea.vmem (!%p2829_p5), [#allocation2], %s1744_s4 }
  0x91   : > { %2258 = dma.done.wait (%p2830_p6), %s331_s18, 256  }
  0x92   : > { %2260 = vsyncadd (%p2830_p6), %s331_s18, 4294967040  ;;  %s339_s19 = sand.u32 1, %s2360_s28   ;;  %s2565_s17 = scalar_lea.vmem [#allocation5], %s1744_s4 }
  0x93   : > { %s340_s15 = scalar_lea.sflag [#allocation6], %s339_s19 }
  0x94   : > { %2262 = dma.done.wait (%p2830_p6), %s340_s15, 512  }
  0x95   : > { %2264 = vsyncadd (%p2830_p6), %s340_s15, 4294966784  ;;  %s2571_s10 = scalar_lea.vmem [#allocation7], %s1744_s4  ;;  %p2831_p3 = scmp.eq.s32.totalorder %s2360_s28, 0 }
  0x97   : > { %2266 = dma.done.wait (%p2831_p3), [#allocation9], 320   ;;  %p2832_p13 = pmov %p2831_p3 }
  0x98   : > { %v2296_v0 = vmov 0.0   ;;  %vm2297_vm0 = vmmov 0   ;;  %vm413_vm1 = vcmask 1043456   ;;  %v406_v1 = vld [vmem:[#allocation8] sm:$0xf]  ;;  %vm409_vm2 = vcmask 64512  }
  0x99   : > { %2268 = vsyncadd (%p2832_p13), [#allocation9], 4294966976  ;;  %1844 = vmatprep.subr.bf16.mxu1 %v2296_v0  ;;  %1838 = vmatprep.subr.bf16.mxu0 %v2296_v0  ;;  %v405_v2 = vld [vmem:[%s2789_s3] sm:$0xf]  ;;  %v2587_v3 = vsel %vm413_vm1, %v406_v1, 0  ;;  %s1749_s23 = sshll.u32 %s2554_s0, 3 }
  0x9a   : > { %1846 = vmatprep.mubr.msk.bf16.mxu1 %vm2297_vm0, %v2296_v0  ;;  %1840 = vmatprep.mubr.msk.bf16.mxu0 %vm2297_vm0, %v2296_v0  ;;  %v2590_v4 = vsel %vm413_vm1, %v405_v2, 0  ;;  %v457_v5 = vld [vmem:[%s2565_s17] sm:$0xf]  ;;  %v1755_v32 = vld [vmem:[%s2558_s20 + $0x4] sm:$0xf]  ;;  %s1784_s1 = sshll.u32 %s2360_s28, 7 }
  0x9b   : > { %1845 = vmatpush3.bf16.msra.mxu1 %v2587_v3  ;;  %1839 = vmatpush3.bf16.msra.mxu0 %v2590_v4  ;;  %v408_v6 = vld [vmem:[%s2558_s20] sm:$0xf]  ;;  %v1757_v39 = vld [vmem:[%s2565_s17 + $0x4] sm:$0xf]  ;;  %s400_s16 = scalar_lea.vmem [#allocation11], %s1749_s23  ;;  %vm1581_vm3 = vcmask 261120   ;;  %s2743_s21 = scalar_lea.hbm %s2793_s7, %s1784_s1 }
  0x9c   : > { %1856 = vmatprep.subr.bf16.mxu1 %v2296_v0  ;;  %1850 = vmatprep.subr.bf16.mxu0 %v2296_v0  ;;  %v407_v7 = vld [vmem:[%s2791_s5] sm:$0xf]  ;;  %v1759_v44 = vld [vmem:[%s2571_s10 + $0x4] sm:$0xf]  ;;  %s1597_s27 = sshll.u32 %s400_s16, 4  ;;  %s1584_s9 = scalar_lea.sflag [#allocation4], %s2554_s0  ;;  %s2745_s27 = int_to_ptr.vmem [resolvable:$true] %s1597_s27 }
  0x9d   : > { %v2608_v8 = vsel %vm413_vm1, %v407_v7, 0  ;;  %v504_v9 = vld [vmem:[%s2571_s10] sm:$0xf]  ;;  %s2215_s28 = scalar_lea.vmem %s2745_s27, 128  ;;  %p2833_p8 = scmp.ne.s32.totalorder %s2815_s13, 0 }
  0x9e   : > { %1847 = vmatmul.mubr.msk.bf16.vlgmr.msra.gmra.mxu1 %vm409_vm2, %v457_v5  ;;  %1841 = vmatmul.mubr.msk.bf16.vlgmr.msra.gmra.mxu0 %vm409_vm2, %v408_v6  ;;  %p2216_p7 = scmp.ne.s32.totalorder %s2745_s27, %s2215_s28  ;;  %s2298_s4 = smov [#allocation11]  }
  0x9f   : > { %1858 = vmatprep.mubr.msk.bf16.mxu1 %vm2297_vm0, %v2296_v0  ;;  %1852 = vmatprep.mubr.msk.bf16.mxu0 %vm2297_vm0, %v2296_v0  ;;  %s2219_s18 = sshll.u32 %s2298_s4, 4  ;;  %s2220_s18 = int_to_ptr.vmem [resolvable:$false] %s2219_s18 }
  0xa0   : > { %1851 = vmatpush3.bf16.msra.mxu0 %v2608_v8  ;;  %p2217_p1 = pnand %p2216_p7, %p2833_p8  ;;  %p2222_p10 = scmp.lt.s32.totalorder %s2745_s27, %s2220_s18 }
  0xa1   : > { %1862 = vmatprep.subr.bf16.mxu0 %v2296_v0 }
  0xa2   : > { %p2218_p9 = pneg %p2217_p1 }
  0xa6   : > { %1853 = vmatmul.mubr.msk.bf16.vlgmr.msra.gmra.mxu0 %vm409_vm2, %v504_v9 }
  0xa7   : > { %1864 = vmatprep.mubr.msk.bf16.mxu0 %vm2297_vm0, %v2296_v0 }
 0x15e   : > { %v498_v10 = vpop.f32.mrf.mxu1  ;;  %v451_v11 = vpop.f32.mrf.mxu0 }
 0x15f   : > { %v552_v12 = vpack.c.bf16 %v498_v10, %v498_v10  ;;  %v551_v20 = vpack.c.bf16 %v451_v11, %v451_v11  ;;  %v659_v11 = vld [vmem:[#allocation10] sm:$0xf] }
 0x160   : > { %v1848_v13 = vpop.f32.mrf.mxu1  ;;  %v1842_v14 = vpop.f32.mrf.mxu0 }
 0x161   : > { %v557_v15 = vsel %vm409_vm2, %v552_v12, 0 }
 0x162   : > { %v501_v16 = vpop.f32.mrf.mxu1  ;;  %1857 = vmatpush3.bf16.xpose.msra.mxu1 %v557_v15  ;;  %v454_v17 = vpop.f32.mrf.mxu0  ;;  %v955_v15 = vsel %vm413_vm1, %v659_v11, 0 }
 0x163   : > { %1868 = vmatprep.subr.bf16.mxu1 %v2296_v0 }
 0x164   : > { %v1849_v18 = vpop.f32.mrf.mxu1  ;;  %v1843_v19 = vpop.f32.mrf.mxu0 }
 0x165   : > { %v904_v19 = vld [vmem:[#allocation10 + $0x4] sm:$0xf] }
 0x166   : > { %v545_v26 = vpop.f32.mrf.mxu0 }
 0x167   : > { %v609_v27 = vpack.c.bf16 %v545_v26, %v545_v26 }
 0x168   : > { %v1854_v28 = vpop.f32.mrf.mxu0 }
 0x169   : > { %1859 = vmatmul.mubr.msk.bf16.vlgmr.msra.gmra.mxu1 %vm409_vm2, %v551_v20  ;;  %v614_v29 = vsel %vm413_vm1, %v609_v27, 0  ;;  %v909_v20 = vsel %vm413_vm1, %v904_v19, 0 }
 0x16a   : > { %1869 = vmatpush3.bf16.msra.mxu1 %v2590_v4  ;;  %1870 = vmatprep.mubr.msk.bf16.mxu1 %vm2297_vm0, %v2296_v0  ;;  %v548_v30 = vpop.f32.mrf.mxu0 }
 0x16b   : > { %1880 = vmatprep.subr.bf16.mxu1 %v2296_v0  ;;  %1863 = vmatpush3.bf16.msra.mxu0 %v614_v29 }
 0x16c   : > { %1874 = vmatprep.subr.bf16.mxu0 %v2296_v0  ;;  %v1855_v31 = vpop.f32.mrf.mxu0 }
 0x171   : > { %1871 = vmatmul.mubr.msk.bf16.vlgmr.msra.gmra.mxu1 %vm409_vm2, %v1755_v32  ;;  %v1765_v32 = vld [vmem:[%s2558_s20 + $0x8] sm:$0xf] }
 0x172   : > { %1881 = vmatpush3.bf16.msra.mxu1 %v2608_v8  ;;  %1882 = vmatprep.mubr.msk.bf16.mxu1 %vm2297_vm0, %v2296_v0 }
 0x173   : > { %1892 = vmatprep.subr.bf16.mxu1 %v2296_v0 }
 0x179   : > { %1883 = vmatmul.mubr.msk.bf16.vlgmr.msra.gmra.mxu1 %vm409_vm2, %v1759_v44 }
 0x17a   : > { %1894 = vmatprep.mubr.msk.bf16.mxu1 %vm2297_vm0, %v2296_v0 }
 0x229   : > { %v593_v21 = vpop.f32.mrf.mxu1 }
 0x22a   : > { %v599_v22 = vsel %vm409_vm2, %v593_v21, -inf }
 0x22b   : > { %600 = vmax.xlane.f32.xlu0 %v599_v22  ;;  %v1860_v23 = vpop.f32.mrf.mxu1 }
 0x22d   : > { %v596_v24 = vpop.f32.mrf.mxu1 }
 0x22f   : > { %v1861_v25 = vpop.f32.mrf.mxu1 }
 0x231   : > { %v699_v40 = vpop.f32.mrf.mxu1 }
 0x232   : > { %v795_v55 = vpack.c.bf16 %v699_v40, %v699_v40 }
 0x233   : > { %v1872_v41 = vpop.f32.mrf.mxu1 }
 0x234   : > { %v1769_v41 = vld [vmem:[%s2571_s10 + $0x8] sm:$0xf] }
 0x235   : > { %v702_v42 = vpop.f32.mrf.mxu1 }
 0x237   : > { %v1873_v43 = vpop.f32.mrf.mxu1 }
 0x239   : > { %v789_v61 = vpop.f32.mrf.mxu1 }
 0x23a   : > { %v853_v62 = vpack.c.bf16 %v789_v61, %v789_v61 }
 0x23b   : > { %v1884_v63 = vpop.f32.mrf.mxu1 }
 0x23c   : > { %v858_v1 = vsel %vm413_vm1, %v853_v62, 0 }
 0x23d   : > { %v792_v2 = vpop.f32.mrf.mxu1  ;;  %1893 = vmatpush3.bf16.msra.mxu1 %v858_v1 }
 0x23e   : > { %1904 = vmatprep.subr.bf16.mxu1 %v2296_v0 }
 0x23f   : > { %v1885_v5 = vpop.f32.mrf.mxu1 }
 0x2b4   : > { %v601_v33 = vpop.xlane.xlu0 %600 }
 0x2b5   : > { %v602_v34 = vsub.f32 %v593_v21, %v601_v33  ;;  %v1767_v21 = vld [vmem:[%s2565_s17 + $0x8] sm:$0xf] }
 0x2b7   : > { %v603_v35 = vmul.f32 1.442695, %v602_v34 }
 0x2b9   : > { %2063 = vpow2.f32 %v603_v35 }
 0x2c6   : > { %v2064_v36 = vpop.eup %2063 }
 0x2c7   : > { %v605_v37 = vsel %vm409_vm2, %v2064_v36, 0.0  ;;  %v608_v38 = vpack.c.bf16 %v2064_v36, %v2064_v36 }
 0x2c8   : > { %606 = vadd.xlane.f32.xlu1 %v605_v37 }
 0x2c9   : > { %1865 = vmatmul.mubr.msk.bf16.vlgmr.msra.gmra.mxu0 %vm409_vm2, %v608_v38 }
 0x2ca   : > { %1875 = vmatpush3.bf16.msra.mxu0 %v2587_v3  ;;  %1876 = vmatprep.mubr.msk.bf16.mxu0 %vm2297_vm0, %v2296_v0 }
 0x2cb   : > { %1886 = vmatprep.subr.bf16.mxu0 %v2296_v0 }
 0x2d1   : > { %1877 = vmatmul.mubr.msk.bf16.vlgmr.msra.gmra.mxu0 %vm409_vm2, %v1757_v39 }
 0x2d2   : > { %1888 = vmatprep.mubr.msk.bf16.mxu0 %vm2297_vm0, %v2296_v0 }
 0x351   : > { %v607_v10 = vpop.xlane.xlu1 %606 }
 0x389   : > { %v650_v45 = vpop.f32.mrf.mxu0 }
 0x38b   : > { %v1866_v46 = vpop.f32.mrf.mxu0 }
 0x38d   : > { %v653_v47 = vpop.f32.mrf.mxu0 }
 0x38f   : > { %v1867_v48 = vpop.f32.mrf.mxu0 }
 0x391   : > { %v744_v49 = vpop.f32.mrf.mxu0 }
 0x392   : > { %v796_v50 = vpack.c.bf16 %v744_v49, %v744_v49 }
 0x393   : > { %v1878_v51 = vpop.f32.mrf.mxu0 }
 0x394   : > { %v801_v52 = vsel %vm409_vm2, %v796_v50, 0 }
 0x395   : > { %v747_v53 = vpop.f32.mrf.mxu0  ;;  %1887 = vmatpush3.bf16.xpose.msra.mxu0 %v801_v52 }
 0x396   : > { %1898 = vmatprep.subr.bf16.mxu0 %v2296_v0 }
 0x397   : > { %v1879_v54 = vpop.f32.mrf.mxu0 }
 0x39c   : > { %1889 = vmatmul.mubr.msk.bf16.vlgmr.msra.gmra.mxu0 %vm409_vm2, %v795_v55 }
 0x39d   : > { %1900 = vmatprep.mubr.msk.bf16.mxu0 %vm2297_vm0, %v2296_v0  ;;  %1899 = vmatpush3.bf16.msra.mxu0 %v909_v20 }
 0x39e   : > { %1910 = vmatprep.subr.bf16.mxu0 %v2296_v0 }
 0x45c   : > { %v837_v56 = vpop.f32.mrf.mxu0 }
 0x45d   : > { %v843_v57 = vsel %vm409_vm2, %v837_v56, -inf }
 0x45e   : > { %844 = vmax.xlane.f32.xlu0 %v843_v57  ;;  %v1890_v58 = vpop.f32.mrf.mxu0 }
 0x460   : > { %v840_v59 = vpop.f32.mrf.mxu0 }
 0x462   : > { %v1891_v60 = vpop.f32.mrf.mxu0 }
 0x4e7   : > { %v845_v6 = vpop.xlane.xlu0 %844 }
 0x4e8   : > { %v846_v7 = vsub.f32 %v837_v56, %v845_v6 }
 0x4ea   : > { %v847_v9 = vmul.f32 1.442695, %v846_v7  ;;  %v1241_v7 = vld [vmem:[#allocation10 + $0x8] sm:$0xf] }
 0x4ec   : > { %2065 = vpow2.f32 %v847_v9  ;;  %v1246_v9 = vsel %vm413_vm1, %v1241_v7, 0 }
 0x4ed   : > { %2067 = vrcp.f32 %v607_v10  ;;  %v1774_v10 = vld [vmem:[%s2558_s20 + $0xc] sm:$0xf]  ;;  %s2221_s20 = scalar_lea.vmem %s2220_s18, 256 }
 0x4ee   : > { %p2223_p2 = scmp.lt.s32.totalorder %s2221_s20, %s2215_s28 }
 0x4f0   : > { %p2224_p0 = por %p2223_p2, %p2222_p10 }
 0x4f2   : > { %p2225_p4 = pnand %p2224_p0, %p2218_p9 }
 0x4f9   : > { %v2066_v12 = vpop.eup %2065 }
 0x4fa   : > { %v849_v13 = vsel %vm409_vm2, %v2066_v12, 0.0  ;;  %v852_v14 = vpack.c.bf16 %v2066_v12, %v2066_v12  ;;  %v2068_v16 = vpop.eup %2067 }
 0x4fb   : > { %850 = vadd.xlane.f32.xlu1 %v849_v13  ;;  %v657_v17 = vmul.f32 %v2068_v16, %v650_v45 }
 0x4fc   : > { %1895 = vmatmul.mubr.msk.bf16.vlgmr.msra.gmra.mxu1 %vm409_vm2, %v852_v14 }
 0x4fd   : > { %1905 = vmatpush3.bf16.msra.mxu1 %v955_v15  ;;  %1906 = vmatprep.mubr.msk.bf16.mxu1 %vm2297_vm0, %v2296_v0  ;;  %v658_v18 = vpack.c.bf16 %v657_v17, %v657_v17 }
 0x4fe   : > { %1916 = vmatprep.subr.bf16.mxu1 %v2296_v0 }
 0x504   : > { %1907 = vmatmul.mubr.msk.bf16.vlgmr.msra.gmra.mxu1 %vm409_vm2, %v658_v18 }
 0x505   : > { %1917 = vmatpush3.bf16.msra.mxu1 %v2587_v3  ;;  %1918 = vmatprep.mubr.msk.bf16.mxu1 %vm2297_vm0, %v2296_v0 }
 0x506   : > { %1928 = vmatprep.subr.bf16.mxu1 %v2296_v0 }
 0x50c   : > { %1919 = vmatmul.mubr.msk.bf16.vlgmr.msra.gmra.mxu1 %vm409_vm2, %v1767_v21 }
 0x50d   : > { %1930 = vmatprep.mubr.msk.bf16.mxu1 %vm2297_vm0, %v2296_v0 }
 0x584   : > { %v851_v22 = vpop.xlane.xlu1 %850 }
 0x585   : > { %2069 = vrcp.f32 %v851_v22  ;;  %v1778_v22 = vld [vmem:[%s2571_s10 + $0xc] sm:$0xf] }
 0x592   : > { %v2070_v23 = vpop.eup %2069 }
 0x5bc   : > { %v894_v24 = vpop.f32.mrf.mxu1 }
 0x5bd   : > { %v901_v25 = vmul.f32 %v2070_v23, %v894_v24 }
 0x5be   : > { %v1896_v26 = vpop.f32.mrf.mxu1 }
 0x5bf   : > { %v902_v27 = vpack.c.bf16 %v901_v25, %v901_v25 }
 0x5c0   : > { %v897_v28 = vpop.f32.mrf.mxu1 }
 0x5c1   : > { %1901 = vmatmul.mubr.msk.bf16.vlgmr.msra.gmra.mxu0 %vm409_vm2, %v902_v27 }
 0x5c2   : > { %v1897_v29 = vpop.f32.mrf.mxu1  ;;  %1911 = vmatpush3.bf16.msra.mxu0 %v2590_v4  ;;  %1912 = vmatprep.mubr.msk.bf16.mxu0 %vm2297_vm0, %v2296_v0 }
 0x5c3   : > { %1922 = vmatprep.subr.bf16.mxu0 %v2296_v0 }
 0x5c4   : > { %v2676_v30 = vpop.f32.mrf.mxu1 }
 0x5c6   : > { %v1908_v31 = vpop.f32.mrf.mxu1 }
 0x5c8   : > { %v994_v33 = vpop.f32.mrf.mxu1 }
 0x5c9   : > { %1913 = vmatmul.mubr.msk.bf16.vlgmr.msra.gmra.mxu0 %vm409_vm2, %v1765_v32 }
 0x5ca   : > { %v1909_v34 = vpop.f32.mrf.mxu1  ;;  %1923 = vmatpush3.bf16.msra.mxu0 %v2608_v8  ;;  %1924 = vmatprep.mubr.msk.bf16.mxu0 %vm2297_vm0, %v2296_v0 }
 0x5cb   : > { %1934 = vmatprep.subr.bf16.mxu0 %v2296_v0 }
 0x5cc   : > { %v1081_v35 = vpop.f32.mrf.mxu1 }
 0x5cd   : > { %v1133_v36 = vpack.c.bf16 %v1081_v35, %v1081_v35 }
 0x5ce   : > { %v1920_v37 = vpop.f32.mrf.mxu1 }
 0x5cf   : > { %v1138_v38 = vsel %vm409_vm2, %v1133_v36, 0 }
 0x5d0   : > { %v1084_v39 = vpop.f32.mrf.mxu1  ;;  %1929 = vmatpush3.bf16.xpose.msra.mxu1 %v1138_v38 }
 0x5d1   : > { %1940 = vmatprep.subr.bf16.mxu1 %v2296_v0  ;;  %1925 = vmatmul.mubr.msk.bf16.vlgmr.msra.gmra.mxu0 %vm409_vm2, %v1769_v41 }
 0x5d2   : > { %v1921_v40 = vpop.f32.mrf.mxu1  ;;  %1936 = vmatprep.mubr.msk.bf16.mxu0 %vm2297_vm0, %v2296_v0 }
 0x681   : > { %v2690_v42 = vpop.f32.mrf.mxu0 }
 0x683   : > { %v1902_v43 = vpop.f32.mrf.mxu0 }
 0x685   : > { %v948_v44 = vpop.f32.mrf.mxu0 }
 0x687   : > { %v1903_v45 = vpop.f32.mrf.mxu0 }
 0x689   : > { %v1036_v46 = vpop.f32.mrf.mxu0 }
 0x68a   : > { %v1132_v47 = vpack.c.bf16 %v1036_v46, %v1036_v46 }
 0x68b   : > { %v1914_v48 = vpop.f32.mrf.mxu0 }
 0x68c   : > { %1931 = vmatmul.mubr.msk.bf16.vlgmr.msra.gmra.mxu1 %vm409_vm2, %v1132_v47 }
 0x68d   : > { %v1039_v49 = vpop.f32.mrf.mxu0  ;;  %1942 = vmatprep.mubr.msk.bf16.mxu1 %vm2297_vm0, %v2296_v0  ;;  %1941 = vmatpush3.bf16.msra.mxu1 %v1246_v9 }
 0x68e   : > { %1952 = vmatprep.subr.bf16.mxu1 %v2296_v0 }
 0x68f   : > { %v1915_v50 = vpop.f32.mrf.mxu0 }
 0x691   : > { %v1126_v56 = vpop.f32.mrf.mxu0 }
 0x692   : > { %v1190_v57 = vpack.c.bf16 %v1126_v56, %v1126_v56 }
 0x693   : > { %v1926_v58 = vpop.f32.mrf.mxu0 }
 0x694   : > { %v1195_v59 = vsel %vm413_vm1, %v1190_v57, 0 }
 0x695   : > { %v1129_v60 = vpop.f32.mrf.mxu0  ;;  %1935 = vmatpush3.bf16.msra.mxu0 %v1195_v59 }
 0x696   : > { %1946 = vmatprep.subr.bf16.mxu0 %v2296_v0 }
 0x697   : > { %v1927_v61 = vpop.f32.mrf.mxu0 }
 0x74c   : > { %v1174_v51 = vpop.f32.mrf.mxu1 }
 0x74d   : > { %v1180_v52 = vsel %vm409_vm2, %v1174_v51, -inf }
 0x74e   : > { %1181 = vmax.xlane.f32.xlu0 %v1180_v52  ;;  %v1932_v53 = vpop.f32.mrf.mxu1 }
 0x750   : > { %v1177_v54 = vpop.f32.mrf.mxu1 }
 0x752   : > { %v1933_v55 = vpop.f32.mrf.mxu1 }
 0x7d7   : > { %v1182_v62 = vpop.xlane.xlu0 %1181 }
 0x7d8   : > { %v1183_v63 = vsub.f32 %v1174_v51, %v1182_v62  ;;  %v1533_v51 = vld [vmem:[#allocation10 + $0xc] sm:$0xf] }
 0x7d9   : > { %v1538_v52 = vsel %vm413_vm1, %v1533_v51, 0 }
 0x7da   : > { %v1184_v1 = vmul.f32 1.442695, %v1183_v63 }
 0x7dc   : > { %2071 = vpow2.f32 %v1184_v1 }
 0x7e9   : > { %v2072_v2 = vpop.eup %2071 }
 0x7ea   : > { %v1186_v5 = vsel %vm409_vm2, %v2072_v2, 0.0  ;;  %v1189_v6 = vpack.c.bf16 %v2072_v2, %v2072_v2 }
 0x7eb   : > { %1187 = vadd.xlane.f32.xlu1 %v1186_v5 }
 0x7ec   : > { %1937 = vmatmul.mubr.msk.bf16.vlgmr.msra.gmra.mxu0 %vm409_vm2, %v1189_v6 }
 0x7ed   : > { %1947 = vmatpush3.bf16.msra.mxu0 %v2590_v4  ;;  %1948 = vmatprep.mubr.msk.bf16.mxu0 %vm2297_vm0, %v2296_v0 }
 0x7ee   : > { %1958 = vmatprep.subr.bf16.mxu0 %v2296_v0 }
 0x7f4   : > { %1949 = vmatmul.mubr.msk.bf16.vlgmr.msra.gmra.mxu0 %vm409_vm2, %v1774_v10 }
 0x7f5   : > { %1959 = vmatpush3.bf16.msra.mxu0 %v2608_v8  ;;  %1960 = vmatprep.mubr.msk.bf16.mxu0 %vm2297_vm0, %v2296_v0  ;;  %v1776_v8 = vld [vmem:[%s2565_s17 + $0xc] sm:$0xf] }
 0x7f6   : > { %1970 = vmatprep.subr.bf16.mxu0 %v2296_v0 }
 0x7fc   : > { %1961 = vmatmul.mubr.msk.bf16.vlgmr.msra.gmra.mxu0 %vm409_vm2, %v1778_v22 }
 0x7fd   : > { %1972 = vmatprep.mubr.msk.bf16.mxu0 %vm2297_vm0, %v2296_v0 }
 0x874   : > { %v1188_v4 = vpop.xlane.xlu1 %1187 }
 0x875   : > { %2073 = vrcp.f32 %v1188_v4 }
 0x882   : > { %v2074_v11 = vpop.eup %2073 }
 0x8ac   : > { %v1231_v12 = vpop.f32.mrf.mxu0 }
 0x8ad   : > { %v1238_v13 = vmul.f32 %v2074_v11, %v1231_v12 }
 0x8ae   : > { %v1938_v14 = vpop.f32.mrf.mxu0 }
 0x8af   : > { %v1239_v15 = vpack.c.bf16 %v1238_v13, %v1238_v13 }
 0x8b0   : > { %v1234_v16 = vpop.f32.mrf.mxu0 }
 0x8b1   : > { %1943 = vmatmul.mubr.msk.bf16.vlgmr.msra.gmra.mxu1 %vm409_vm2, %v1239_v15 }
 0x8b2   : > { %v1939_v17 = vpop.f32.mrf.mxu0  ;;  %1953 = vmatpush3.bf16.msra.mxu1 %v2587_v3  ;;  %1954 = vmatprep.mubr.msk.bf16.mxu1 %vm2297_vm0, %v2296_v0  ;;  %v992_v3 = vadd.f32 %v2676_v30, %v2690_v42 }
 0x8b3   : > { %1964 = vmatprep.subr.bf16.mxu1 %v2296_v0 }
 0x8b4   : > { %v1328_v18 = vpop.f32.mrf.mxu0 }
 0x8b5   : > { %v1424_v35 = vpack.c.bf16 %v1328_v18, %v1328_v18 }
 0x8b6   : > { %v1950_v19 = vpop.f32.mrf.mxu0 }
 0x8b8   : > { %v1331_v20 = vpop.f32.mrf.mxu0 }
 0x8b9   : > { %1955 = vmatmul.mubr.msk.bf16.vlgmr.msra.gmra.mxu1 %vm409_vm2, %v1776_v8 }
 0x8ba   : > { %1966 = vmatprep.mubr.msk.bf16.mxu1 %vm2297_vm0, %v2296_v0  ;;  %v1951_v21 = vpop.f32.mrf.mxu0 }
 0x8bc   : > { %v1418_v40 = vpop.f32.mrf.mxu0 }
 0x8bd   : > { %v1482_v41 = vpack.c.bf16 %v1418_v40, %v1418_v40 }
 0x8be   : > { %v1962_v42 = vpop.f32.mrf.mxu0 }
 0x8bf   : > { %v1487_v43 = vsel %vm413_vm1, %v1482_v41, 0 }
 0x8c0   : > { %v1421_v44 = vpop.f32.mrf.mxu0  ;;  %1971 = vmatpush3.bf16.msra.mxu0 %v1487_v43 }
 0x8c2   : > { %v1963_v45 = vpop.f32.mrf.mxu0 }
 0x971   : > { %v1282_v23 = vpop.f32.mrf.mxu1 }
 0x972   : > { %v1288_v24 = vadd.f32 %v1282_v23, %v992_v3 }
 0x973   : > { %v1944_v25 = vpop.f32.mrf.mxu1 }
 0x975   : > { %v1285_v26 = vpop.f32.mrf.mxu1 }
 0x977   : > { %v1945_v27 = vpop.f32.mrf.mxu1 }
 0x979   : > { %v1373_v28 = vpop.f32.mrf.mxu1 }
 0x97a   : > { %v1425_v29 = vpack.c.bf16 %v1373_v28, %v1373_v28 }
 0x97b   : > { %v1956_v31 = vpop.f32.mrf.mxu1 }
 0x97c   : > { %v1430_v32 = vsel %vm409_vm2, %v1425_v29, 0 }
 0x97d   : > { %v1376_v33 = vpop.f32.mrf.mxu1  ;;  %1965 = vmatpush3.bf16.xpose.msra.mxu1 %v1430_v32 }
 0x97e   : > { %1976 = vmatprep.subr.bf16.mxu1 %v2296_v0 }
 0x97f   : > { %v1957_v34 = vpop.f32.mrf.mxu1 }
 0x984   : > { %1967 = vmatmul.mubr.msk.bf16.vlgmr.msra.gmra.mxu1 %vm409_vm2, %v1424_v35 }
 0x985   : > { %1978 = vmatprep.mubr.msk.bf16.mxu1 %vm2297_vm0, %v2296_v0  ;;  %1977 = vmatpush3.bf16.msra.mxu1 %v1538_v52 }
 0xa44   : > { %v1466_v30 = vpop.f32.mrf.mxu1 }
 0xa45   : > { %v1472_v36 = vsel %vm409_vm2, %v1466_v30, -inf }
 0xa46   : > { %1473 = vmax.xlane.f32.xlu0 %v1472_v36  ;;  %v1968_v37 = vpop.f32.mrf.mxu1 }
 0xa48   : > { %v1469_v38 = vpop.f32.mrf.mxu1 }
 0xa4a   : > { %v1969_v39 = vpop.f32.mrf.mxu1 }
 0xacf   : > { %v1474_v46 = vpop.xlane.xlu0 %1473 }
 0xad0   : > { %v1475_v47 = vsub.f32 %v1466_v30, %v1474_v46 }
 0xad2   : > { %v1476_v48 = vmul.f32 1.442695, %v1475_v47 }
 0xad4   : > { %2075 = vpow2.f32 %v1476_v48 }
 0xae1   : > { %v2076_v0 = vpop.eup %2075 }
 0xae2   : > { %v1478_v49 = vsel %vm409_vm2, %v2076_v0, 0.0  ;;  %v1481_v50 = vpack.c.bf16 %v2076_v0, %v2076_v0 }
 0xae3   : > { %1479 = vadd.xlane.f32.xlu1 %v1478_v49 }
 0xae4   : > { %1973 = vmatmul.mubr.msk.bf16.vlgmr.msra.gmra.mxu0 %vm409_vm2, %v1481_v50 }
 0xb6c   : > { %v1480_v53 = vpop.xlane.xlu1 %1479 }
 0xb6d   : > { %2077 = vrcp.f32 %v1480_v53 }
 0xb7a   : > { %v2078_v54 = vpop.eup %2077 }
 0xba4   : > { %v1523_v55 = vpop.f32.mrf.mxu0 }
 0xba5   : > { %v1530_v56 = vmul.f32 %v2078_v54, %v1523_v55 }
 0xba6   : > { %v1974_v57 = vpop.f32.mrf.mxu0 }
 0xba7   : > { %v1531_v58 = vpack.c.bf16 %v1530_v56, %v1530_v56 }
 0xba8   : > { %v1526_v59 = vpop.f32.mrf.mxu0 }
 0xba9   : > { %1979 = vmatmul.mubr.msk.bf16.vlgmr.msra.gmra.mxu1 %vm409_vm2, %v1531_v58 }
 0xbaa   : > { %v1975_v60 = vpop.f32.mrf.mxu0 }
 0xc69   : > { %v1574_v61 = vpop.f32.mrf.mxu1 }
 0xc6a   : > { %v1580_v62 = vadd.f32 %v1574_v61, %v1288_v24 }
 0xc6b   : > { %v1980_v63 = vpop.f32.mrf.mxu1 }
 0xc6c   : > { %1582 = vst.msk [vmem:[%s400_s16] sm:$0xff] %vm1581_vm3, %v1580_v62 }
 0xc6d   : > { %v1577_v1 = vpop.f32.mrf.mxu1 }
 0xc6e   : > { %2228 = shalt.err (!%p2225_p4)
}
 0xc6f   : > { %s2229_s19 = scalar_lea.hbm %s2743_s21, 128  ;;  %s2233_s17 = scalar_lea.hbm %s2793_s7, 256 }
 0xc70   : > { %p2230_p11 = scmp.ne.s32.totalorder %s2743_s21, %s2229_s19  ;;  %p2234_p6 = scmp.lt.s32.totalorder %s2743_s21, %s2793_s7 }
 0xc71   : > { %p2235_p3 = scmp.lt.s32.totalorder %s2233_s17, %s2229_s19 }
 0xc72   : > { %p2231_p12 = pnand %p2230_p11, %p2833_p8 }
 0xc73   : > { %p2236_p13 = por %p2235_p3, %p2234_p6 }
 0xc74   : > { %p2232_p5 = pneg %p2231_p12 }
 0xc76   : > { %p2237_p7 = pnand %p2236_p13, %p2232_p5 }
 0xc78   : > { %2240 = shalt.err (!%p2237_p7)
}
 0xc79   : > { %1996 = dma.vmem_to_hbm [thread:$0]  (%p2833_p8), %s2745_s27, 128, %s2743_s21, %s1584_s9   ;;  %v1981_v2 = vpop.f32.mrf.mxu1 }
 0xc7a PF: > { %s2834_s30 = sld [smem:[#allocation16_spill]]  ;;  %s1609_s11 = sand.u32 1, %s2275_s24  }
 0xc7b   : > { %p2835_p1 = scmp.ne.s32.totalorder %s2816_s14, 0  ;;  %s1610_s22 = scalar_lea.sflag [#allocation4], %s1609_s11 }
 0xc80   : > { %p2836_p9 = scmp.ge.s32.totalorder %s2834_s30, 2 }
 0xc82   : > { %p2016_p10 = pnand %p2836_p9, %p2835_p1 }
 0xc84   : > { %p2017_p2 = pneg %p2016_p10 }
 0xc86   : > { %2270 = dma.done.wait (%p2017_p2), %s1610_s22, 128  }
 0xc87   : > { %2272 = vsyncadd (%p2017_p2), %s1610_s22, 4294967168  ;;  %s2837_s27 = sld [smem:[#allocation17_spill]]  ;;  %s2839_s24 = smov %s2279_s25 }
 0xc88   : > { %s2838_s13 = sld [smem:[#allocation18_spill]]  ;;  %s2840_s25 = smov %s2283_s26 }
 0xc8d   : > { %p24_p0 = scmp.ge.s32.totalorder %s2837_s27, 4  }
 0xc8e   : > { %s2841_s26 = smov %s2838_s13 }
 0xc8f   :  { %26 = sbr.rel (!%p24_p0) target bundleno = 12 (0xc), region = 137 }
 0xc94   :  { %1615 = vsyncpa [#allocation3], 1 }
 0xc95   :  { %1617 = vsyncpa [#allocation3 + $0x1], 1 }
 0xc96   :  { %1618 = vsyncpa [#allocation6], 1 }
 0xc97   :  { %1620 = vsyncpa [#allocation6 + $0x1], 1 }
 0xc98   :  { %1621 = vsyncpa [#allocation9], 1 }
 0xc99   :  { %1622 = vsyncpa [#allocation4], 1 }
 0xc9a   :  { %1624 = vsyncpa [#allocation4 + $0x1], 1 }

</bundles_post_ra>
